<compile_context>
chip_gen: v6e
topology: v6e:2x2x1
jax: 0.10.0
libtpu: 0.0.40
codegen_flags: <defaults>
</compile_context>

<pallas_src>
import functools

import jax
import jax.numpy as jnp
from jax.experimental import pallas as pl
from jax.experimental.pallas import tpu as pltpu

# ----------------------------- model config ---------------------------------
OBS_DIM = 24                     # raw state size
SKILL_DIM = 8                    # skill vector size
IN_SIZE = OBS_DIM + SKILL_DIM    # NeuralNetwork in_size = 32
HIDDEN = 32                      # both hidden layers (Tanh)
OUT_SIZE = 6                     # NeuralNetwork out_size

IN_PAD = 32                      # state rows padded 24 -> 32 (zero rows; exact)
OUT_PAD = 8                      # W3^T / b3 padded to 8 rows inside the kernel
LANE = 128                       # vreg lane width; batch tiles are multiples of it
MAX_TILE = 512                   # cap per-step lane tile (review: sweep 256-1024)

# Packed parameter buffer: (P_ROWS, HIDDEN) f32.  All row slices 8-aligned.
W1T_R0, W1T_R1 = 0, HIDDEN                  # rows  0:32  W1_obs^T in cols 0:24
W2T_R0, W2T_R1 = W1T_R1, W1T_R1 + HIDDEN    # rows 32:64  W2^T
W3T_R0, W3T_R1 = W2T_R1, W2T_R1 + OUT_PAD   # rows 64:72  W3^T (rows >= 6 zero)
BIAS_R0 = W3T_R1                            # rows 72:104 bias columns:
                                            #   col 0 = b1 + skill @ W1_skill
                                            #   col 1 = b2,  col 2 = b3 (padded)
P_ROWS = BIAS_R0 + HIDDEN                   # 104 (multiple of 8)


# ------------------------------ Pallas kernel --------------------------------
def _critic_kernel(s_ref, p_ref, o_ref):
    """Lane-dense MLP: h=tanh(W1^T s + b1) -> tanh(W2^T h + b2) -> W3^T h + b3.

    s_ref: (IN_PAD, tb)  -- batch on lanes, rows 24:32 are zero padding.
    p_ref: (P_ROWS, 32)  -- packed (transposed) weights + bias columns, resident.
    o_ref: (OUT_SIZE, tb)
    """
    s = s_ref[...]                                          # (32, tb)
    w1t = p_ref[W1T_R0:W1T_R1, :]                           # (32, 32) cols>=24 zero
    w2t = p_ref[W2T_R0:W2T_R1, :]                           # (32, 32)
    w3t = p_ref[W3T_R0:W3T_R1, :]                           # (8, 32)  rows>=6 zero
    b1 = p_ref[BIAS_R0:BIAS_R0 + HIDDEN, 0:1]               # (32, 1) skill folded in
    b2 = p_ref[BIAS_R0:BIAS_R0 + HIDDEN, 1:2]               # (32, 1)
    b3 = p_ref[BIAS_R0:BIAS_R0 + OUT_PAD, 2:3]              # (8, 1)  rows>=6 zero

    h1 = jnp.tanh(jnp.dot(w1t, s, preferred_element_type=jnp.float32) + b1)
    h2 = jnp.tanh(jnp.dot(w2t, h1, preferred_element_type=jnp.float32) + b2)
    out = jnp.dot(w3t, h2, preferred_element_type=jnp.float32) + b3   # (8, tb)
    o_ref[...] = out[:OUT_SIZE, :]                          # (6, tb) lane-dense store


# ------------------------------ call wrappers ---------------------------------
def _choose_tile(b_pad):
    """Pick the lane tile: keep >=2 grid steps when possible (v7x has 2 TCs),
    amortize step overhead with tiles up to MAX_TILE lanes, else one block."""
    n = b_pad // LANE
    if n == 1:
        return LANE                              # single full-array step
    max_tiles = min(n // 2, MAX_TILE // LANE)
    t = 1
    for cand in range(1, max_tiles + 1):
        if n % cand == 0:
            t = cand
    return t * LANE


def _critic_pallas(s_t, packed):
    """s_t: (IN_PAD, B) f32, B % 128 == 0.  Returns (OUT_SIZE, B) f32."""
    b = s_t.shape[1]
    tb = _choose_tile(b)
    flops = 2 * b * (IN_PAD * HIDDEN + HIDDEN * HIDDEN + HIDDEN * OUT_PAD)
    transcendentals = 2 * HIDDEN * b                     # tanh count
    bytes_accessed = (IN_PAD * b + P_ROWS * HIDDEN + OUT_SIZE * b) * 4
    return pl.pallas_call(
        _critic_kernel,
        out_shape=jax.ShapeDtypeStruct((OUT_SIZE, b), jnp.float32),
        grid_spec=pltpu.PrefetchScalarGridSpec(
            num_scalar_prefetch=0,
            grid=(b // tb,),
            in_specs=[
                pl.BlockSpec((IN_PAD, tb), lambda i: (0, i)),
                # resident params (constant index_map).  pipeline_mode=
                # pl.Buffered(1) would drop the second 13 KiB buffer; omitted
                # as the win is negligible at this size.
                pl.BlockSpec((P_ROWS, HIDDEN), lambda i: (0, 0)),
            ],
            out_specs=pl.BlockSpec((OUT_SIZE, tb), lambda i: (0, i)),
        ),
        compiler_params=pltpu.CompilerParams(
            dimension_semantics=("parallel",)),          # 2x on v7x (2 TCs)
        cost_estimate=pl.CostEstimate(
            flops=flops, transcendentals=transcendentals,
            bytes_accessed=bytes_accessed),
    )(s_t, packed)


@jax.jit
def critic_forward(s_batch, packed):
    """Batched forward.  s_batch: (B, OBS_DIM) f32 (any B).  Returns (B, OUT_SIZE).

    Handles layout: transpose to batch-on-lanes, pad obs 24->32 rows and the
    batch up to a multiple of 128 lanes, run the lane-dense kernel, slice back.
    """
    b = s_batch.shape[0]
    b_pad = ((b + LANE - 1) // LANE) * LANE
    s_t = jnp.zeros((IN_PAD, b_pad), jnp.float32)
    s_t = s_t.at[:OBS_DIM, :b].set(jnp.asarray(s_batch, jnp.float32).T)
    out_t = _critic_pallas(s_t, packed)                  # (OUT_SIZE, b_pad)
    return out_t[:, :b].T                                # (B, OUT_SIZE)


@jax.jit
def critic_from_diayn_forward(s, params, skill):
    """Original single-state semantics: cat((s, skill)) -> MLP, returns (1, OUT_SIZE).

    Per the performance review, a 1x24 MLP inside a pallas_call is pure
    launch/DMA overhead, so the single-state path runs as plain jitted XLA;
    batch requests and use `critic_forward` for throughput.
    """
    s_row = jnp.asarray(s, jnp.float32).reshape(1, OBS_DIM)
    x = jnp.concatenate([s_row, skill.reshape(1, SKILL_DIM)], axis=1)
    return mlp_forward_ref(x, params)


# --------------------------- params / packing --------------------------------
def init_params(key):
    """PyTorch-style Linear init: U(-1/sqrt(fan_in), 1/sqrt(fan_in))."""
    sizes = (IN_SIZE, HIDDEN, HIDDEN, OUT_SIZE)
    params = []
    for fan_in, fan_out in zip(sizes[:-1], sizes[1:]):
        key, kw, kb = jax.random.split(key, 3)
        bound = 1.0 / jnp.sqrt(jnp.float32(fan_in))
        w = jax.random.uniform(kw, (fan_in, fan_out), jnp.float32, -bound, bound)
        b = jax.random.uniform(kb, (1, fan_out), jnp.float32, -bound, bound)
        params.append((w, b))
    return params


def pack_params(params, skill):
    """Pack transposed W1/W2/W3 + bias columns (skill folded into b1) into one
    (104, 32) f32 buffer.  Re-run whenever weights or skill change."""
    (w1, b1), (w2, b2), (w3, b3) = params
    w1_obs = w1[:OBS_DIM, :]                                  # (24, 32)
    w1_skill = w1[OBS_DIM:, :]                                # (8, 32)
    # self.skill is fixed module state -> fold its first-layer contribution
    # into an effective bias once, at packing time (exact).
    b1_eff = (b1 + skill.reshape(1, SKILL_DIM) @ w1_skill).reshape(HIDDEN)

    packed = jnp.zeros((P_ROWS, HIDDEN), jnp.float32)
    packed = packed.at[W1T_R0:W1T_R1, :OBS_DIM].set(w1_obs.T)             # (32,24)
    packed = packed.at[W2T_R0:W2T_R1, :].set(w2.T)                        # (32,32)
    packed = packed.at[W3T_R0:W3T_R0 + OUT_SIZE, :].set(w3.T)             # (6,32)
    packed = packed.at[BIAS_R0:BIAS_R0 + HIDDEN, 0].set(b1_eff)
    packed = packed.at[BIAS_R0:BIAS_R0 + HIDDEN, 1].set(b2.reshape(HIDDEN))
    packed = packed.at[BIAS_R0:BIAS_R0 + OUT_SIZE, 2].set(b3.reshape(OUT_SIZE))
    return packed


def mlp_forward_ref(x, params):
    """Pure-JAX reference (cat already applied): x is (B, IN_SIZE)."""
    (w1, b1), (w2, b2), (w3, b3) = params
    h = jnp.tanh(x @ w1 + b1)
    h = jnp.tanh(h @ w2 + b2)
    return h @ w3 + b3


# ----------------------------------- main -------------------------------------
if __name__ == "__main__":
    key = jax.random.PRNGKey(0)
    key, ks = jax.random.split(key)

    params = init_params(key)
    skill = jnp.zeros((1, SKILL_DIM), jnp.float32).at[0, 3].set(1.0)  # one-hot skill
    packed = pack_params(params, skill)

    # Batched Pallas path: B = 256 states -> two 128-lane "parallel" grid steps
    # (both v7x TensorCores busy; negligible extra cost on v5e/v6e).
    B = 256
    s_batch = jax.random.normal(ks, (B, OBS_DIM), dtype=jnp.float32)
    out_batched = jax.block_until_ready(critic_forward(s_batch, packed))

    # Ragged batch exercises the pad-to-128 / slice-back path.
    out_ragged = jax.block_until_ready(critic_forward(s_batch[:5], packed))

    # Original single-state forward semantics (plain jitted XLA).
    out_single = jax.block_until_ready(
        critic_from_diayn_forward(s_batch[0], params, skill))

    # Cross-check against the pure-JAX reference (explicit cat, unfused MLP).
    x_ref = jnp.concatenate([s_batch, jnp.tile(skill, (B, 1))], axis=1)
    ref = mlp_forward_ref(x_ref, params)
    assert out_batched.shape == (B, OUT_SIZE)
    assert out_ragged.shape == (5, OUT_SIZE)
    assert out_single.shape == (1, OUT_SIZE)
    assert jnp.allclose(out_batched, ref, atol=1e-5, rtol=1e-5)
    assert jnp.allclose(out_ragged, ref[:5], atol=1e-5, rtol=1e-5)
    assert jnp.allclose(out_single, ref[0:1], atol=1e-5, rtol=1e-5)

    print("KERNEL_OK")
</pallas_src>

<mosaic_0001>
module attributes {stable_mosaic.version = 11 : i64} {
  func.func @_critic_kernel(%arg0: i32, %arg1: memref<32x128xf32, #tpu.memory_space<vmem>>, %arg2: memref<104x32xf32, #tpu.memory_space<vmem>>, %arg3: memref<6x128xf32, #tpu.memory_space<vmem>>) attributes {dimension_semantics = [#tpu.dimension_semantics<parallel>], iteration_bounds = array<i64: 2>, scalar_prefetch = 0 : i64, scratch_operands = 0 : i64, tpu.core_type = #tpu.core_type<tc>, window_params = [{transform_indices = @transform_0, window_bounds = array<i64: 32, 128>}, {pipeline_mode = #tpu.pipeline_mode<synchronous>, transform_indices = @transform_1, window_bounds = array<i64: 104, 32>}, {transform_indices = @transform_2, window_bounds = array<i64: 6, 128>}]} {
    %c0 = arith.constant 0 : index
    %c0_0 = arith.constant 0 : index
    %0 = vector.load %arg1[%c0, %c0_0] : memref<32x128xf32, #tpu.memory_space<vmem>>, vector<32x128xf32>
    %c0_1 = arith.constant 0 : index
    %c0_2 = arith.constant 0 : index
    %1 = vector.load %arg2[%c0_1, %c0_2] : memref<104x32xf32, #tpu.memory_space<vmem>>, vector<32x32xf32>
    %c32 = arith.constant 32 : index
    %c0_3 = arith.constant 0 : index
    %2 = vector.load %arg2[%c32, %c0_3] : memref<104x32xf32, #tpu.memory_space<vmem>>, vector<32x32xf32>
    %c64 = arith.constant 64 : index
    %c0_4 = arith.constant 0 : index
    %3 = vector.load %arg2[%c64, %c0_4] : memref<104x32xf32, #tpu.memory_space<vmem>>, vector<8x32xf32>
    %c72 = arith.constant 72 : index
    %c0_5 = arith.constant 0 : index
    %4 = vector.load %arg2[%c72, %c0_5] : memref<104x32xf32, #tpu.memory_space<vmem>>, vector<32x1xf32>
    %c72_6 = arith.constant 72 : index
    %c1 = arith.constant 1 : index
    %5 = vector.load %arg2[%c72_6, %c1] : memref<104x32xf32, #tpu.memory_space<vmem>>, vector<32x1xf32>
    %c72_7 = arith.constant 72 : index
    %c2 = arith.constant 2 : index
    %6 = vector.load %arg2[%c72_7, %c2] : memref<104x32xf32, #tpu.memory_space<vmem>>, vector<8x1xf32>
    %cst = arith.constant dense<0.000000e+00> : vector<32x128xf32>
    %7 = tpu.matmul %1, %0, %cst {dimension_numbers = #tpu.dot_dimension_numbers<[1], [0], [0], [1], [0, 0, 1, 1], [], []>} : vector<32x32xf32>, vector<32x128xf32>, vector<32x128xf32> -> vector<32x128xf32>
    %8 = vector.broadcast %4 : vector<32x1xf32> to vector<32x128xf32>
    %9 = arith.addf %7, %8 : vector<32x128xf32>
    %10 = math.tanh %9 : vector<32x128xf32>
    %cst_8 = arith.constant dense<0.000000e+00> : vector<32x128xf32>
    %11 = tpu.matmul %2, %10, %cst_8 {dimension_numbers = #tpu.dot_dimension_numbers<[1], [0], [0], [1], [0, 0, 1, 1], [], []>} : vector<32x32xf32>, vector<32x128xf32>, vector<32x128xf32> -> vector<32x128xf32>
    %12 = vector.broadcast %5 : vector<32x1xf32> to vector<32x128xf32>
    %13 = arith.addf %11, %12 : vector<32x128xf32>
    %14 = math.tanh %13 : vector<32x128xf32>
    %cst_9 = arith.constant dense<0.000000e+00> : vector<8x128xf32>
    %15 = tpu.matmul %3, %14, %cst_9 {dimension_numbers = #tpu.dot_dimension_numbers<[1], [0], [0], [1], [0, 0, 1, 1], [], []>} : vector<8x32xf32>, vector<32x128xf32>, vector<8x128xf32> -> vector<8x128xf32>
    %16 = vector.broadcast %6 : vector<8x1xf32> to vector<8x128xf32>
    %17 = arith.addf %15, %16 : vector<8x128xf32>
    %18 = vector.extract_strided_slice %17 {offsets = [0, 0], sizes = [6, 128], strides = [1, 1]} : vector<8x128xf32> to vector<6x128xf32>
    %c0_10 = arith.constant 0 : index
    %c0_11 = arith.constant 0 : index
    %19 = vector.load %arg3[%c0_10, %c0_11] : memref<6x128xf32, #tpu.memory_space<vmem>>, vector<6x128xf32>
    tpu.vector_store %arg3[%c0_10, %c0_11], %18 {strides = array<i32>} : memref<6x128xf32, #tpu.memory_space<vmem>>, vector<6x128xf32>,
    return
  }
  func.func @transform_0(%arg0: i32) -> (i32, i32) {
    %c0_i32 = arith.constant 0 : i32
    %c0_i32_0 = arith.constant 0 : i32
    return %c0_i32, %arg0 : i32, i32
  }
  func.func @transform_1(%arg0: i32) -> (i32, i32) {
    %c0_i32 = arith.constant 0 : i32
    %c0_i32_0 = arith.constant 0 : i32
    %c0_i32_1 = arith.constant 0 : i32
    return %c0_i32, %c0_i32_0 : i32, i32
  }
  func.func @transform_2(%arg0: i32) -> (i32, i32) {
    %c0_i32 = arith.constant 0 : i32
    %c0_i32_0 = arith.constant 0 : i32
    return %c0_i32, %arg0 : i32, i32
  }
}

</mosaic_0001>

<bundles_post_ra>
// kernel: critic_forward.1
= control target key start
LH: loop header
LB: loop body
LE: loop exit
PB: predicated region body
PF: predicated region fallthrough
CT: control target
= control target key end

     0   :  { %7 = vsyncpa [#allocation4], 0  ;;  %s988_s0 = inlined_call_operand.vmem [shape: f32[32,256], index: 0, kind: input, shape index: {}]   ;;  %s989_s1 = inlined_call_operand.vmem [shape: f32[104,32], index: 1, kind: input, shape index: {}]   ;;  %s990_s2 = inlined_call_operand.hbm [shape: f32[6,256], index: 2, kind: output, shape index: {}]  }
   0x1   :  { %9 = vsyncpa [#allocation4 + $0x1], 0  ;;  %s832_s9 = smov 0   ;;  %s834_s10 = smov 0  }
   0x2   :  { %s836_s11 = smov 0   ;;  %s838_s12 = smov 0  }
   0x3 LB: > { %s601_s13 = sadd.s32 4294967295, %s809_s12   ;;  %s602_s14 = sadd.s32 4294967294, %s809_s12   ;;  %s809_s12 = sphi %s838_s12, %s996_s12   ;;  %s805_s11 = sphi %s836_s11, %s995_s11   ;;  %s801_s10 = sphi %s834_s10, %s994_s10   ;;  %s797_s9 = sphi %s832_s9, %s993_s9  }
   0x4   : > { %s855_s15 = sadd.s32 1, %s809_s12   ;;  %s22_s16 = sadd.s32 1, %s805_s11 }
   0x5   : > { %s19_s17 = ssub.s32 %s809_s12, %s855_s15  ;;  %p29_p0 = scmp.ne.s32.totalorder %s805_s11, %s801_s10 }
   0x6   : > { %p20_p1 = scmp.eq.s32.totalorder %s19_s17, 0  ;;  %p30_p2 = scmp.eq.s32.totalorder %s809_s12, 0 }
   0x7   : > { %p80_p3 = scmp.eq.s32.totalorder %s601_s13, 1  ;;  %p85_p4 = scmp.ne.s32.totalorder %s801_s10, %s797_s9 }
   0x8   : > { %s868_s18 = scalar_select %p20_p1, %s805_s11, %s22_s16  }
   0x9   : > { %p31_p5 = por %p30_p2, %p29_p0  ;;  %p870_p6 = por %p80_p3, %p29_p0 }
   0xa   : > { %p86_p7 = scmp.eq.s32.totalorder %s602_s14, 1  ;;  %p604_p9 = scmp.ge.s32.totalorder %s809_s12, 2 }
   0xc   : > { %p874_p8 = por %p86_p7, %p85_p4  ;;  %105 = sbr.rel (%p604_p9) target bundleno = 23 (0x17), region = 20 }
  0x11   : > { %108 = sbr.rel (!%p31_p5) target bundleno = 23 (0x17), region = 24  ;;  %s110_s21 = sand.u32 (%p31_p5), 1, %s805_s11  }
  0x12   : > { %s606_s22 = sshll.u32 (%p31_p5), %s809_s12, 3  ;;  %s605_s23 = sshll.u32 (%p31_p5), %s110_s21, 5 }
  0x13   : > { %s114_s26 = scalar_lea.vmem (%p31_p5), %s988_s0, %s606_s22  ;;  %s112_s27 = scalar_lea.vmem (%p31_p5), [#allocation2], %s605_s23 }
  0x14   : > { %v149_v0 = vld [vmem:[%s114_s26] sm:$0xff] (%p31_p5)  ;;  %v151_v1 = vld [vmem:[%s114_s26 + $0x10] sm:$0xff] (%p31_p5) }
  0x15   : > { %v153_v2 = vld [vmem:[%s114_s26 + $0x20] sm:$0xff] (%p31_p5)  ;;  %150 = vst [vmem:[%s112_s27] sm:$0xff] (%p31_p5), %v149_v0  ;;  %152 = vst [vmem:[%s112_s27 + $0x8] sm:$0xff] (%p31_p5), %v151_v1  ;;  %v155_v3 = vld [vmem:[%s114_s26 + $0x30] sm:$0xff] (%p31_p5) }
  0x16   : > { %154 = vst [vmem:[%s112_s27 + $0x10] sm:$0xff] %v153_v2  ;;  %156 = vst [vmem:[%s112_s27 + $0x18] sm:$0xff] %v155_v3 }
  0x17 PF: > { %p607_p10 = scmp.ge.s32.totalorder %s809_s12, 1  ;;  %p161_p11 = scmp.lt.s32.totalorder %s809_s12, 3 }
  0x19   : > { %p162_p12 = pnand %p607_p10, %p161_p11 }
  0x1a   : > { %s889_s28 = sand.u32 (!%p162_p12), 1, %s801_s10   ;;  %s620_s21 = sshll.u32 (!%p162_p12), %s601_s13, 7 }
  0x1b   : > { %165 = sbr.rel (%p162_p12) target bundleno = 692 (0x2b4), region = 62  ;;  %s608_s3 = sshll.u32 (!%p162_p12), %s889_s28, 5 }
  0x1c   : > { %s170_s8 = scalar_lea.vmem (!%p162_p12), [#allocation2], %s608_s3  ;;  %s609_s17 = sshll.u32 (!%p162_p12), %s889_s28, 3 }
  0x1d   : > { %s188_s22 = scalar_lea.vmem (!%p162_p12), [#allocation3], %s609_s17  ;;  %s951_s26 = scalar_lea.hbm (!%p162_p12), %s990_s2, %s620_s21 }
  0x1e   : > { %s537_s23 = sshll.u32 (!%p162_p12), %s188_s22, 4  ;;  %s524_s27 = scalar_lea.sflag (!%p162_p12), [#allocation4], %s889_s28  ;;  %s538_s23 = int_to_ptr.vmem [resolvable:$true] %s537_s23 }
  0x1f   : > { %s749_s29 = scalar_lea.vmem (!%p162_p12), %s538_s23, 128  ;;  %s816_s30 = smov (!%p162_p12), [#allocation3]  }
  0x20   : > { %v193_v4 = vld [vmem:[%s989_s1] sm:$0xff]  ;;  %vm226_vm0 = vcmask 261120   ;;  %v811_v5 = vmov 0   ;;  %v203_v7 = vld [vmem:[%s989_s1 + $0x50] sm:$0xff]  ;;  %v192_v8 = vld [vmem:[%s170_s8 + $0x18] sm:$0xff]  ;;  %v812_v18 = vmov 1   ;;  %p750_p13 = scmp.ne.s32.totalorder %s538_s23, %s749_s29 }
  0x21   : > { %652 = vmatprep.mubr.msk.f32.mxu0 %vm226_vm0, %v193_v4  ;;  %728 = vset.pattern.permute.xlu1 %v811_v5  ;;  %v205_v6 = vld [vmem:[%s989_s1 + $0x60] sm:$0xff]  ;;  %v191_v9 = vld [vmem:[%s170_s8 + $0x10] sm:$0xff]  ;;  %v905_v10 = vld [vmem:[%s989_s1 + $0x48] sm:$0xff]  ;;  %v813_v38 = vmov 0.0   ;;  %vm814_vm1 = vmmov 0   ;;  %v815_v39 = vmov 2  }
  0x22   : > { %727 = vset.pattern.permute.xlu0 %v811_v5  ;;  %213 = vperm.xlu1 %728, %v203_v7   ;;  %v204_v11 = vld [vmem:[%s989_s1 + $0x58] sm:$0xff]  ;;  %v190_v12 = vld [vmem:[%s170_s8 + $0x8] sm:$0xff]  ;;  %v189_v13 = vld [vmem:[%s170_s8] sm:$0xff]  ;;  %p751_p0 = pnand %p750_p13, %p870_p6  ;;  %s753_s13 = sshll.u32 %s816_s30, 4  ;;  %s754_s13 = int_to_ptr.vmem [resolvable:$false] %s753_s13 }
  0x23   : > { %223 = vperm.xlu0 %727, %v205_v6   ;;  %644 = vmatprep.subr.mxu0 %v192_v8  ;;  %v194_v14 = vld [vmem:[%s989_s1 + $0x8] sm:$0xff]  ;;  %v195_v15 = vld [vmem:[%s989_s1 + $0x10] sm:$0xff]  ;;  %v196_v16 = vld [vmem:[%s989_s1 + $0x18] sm:$0xff]  ;;  %s755_s3 = scalar_lea.vmem %s754_s13, 256  ;;  %p756_p2 = scmp.lt.s32.totalorder %s538_s23, %s754_s13 }
  0x24   : > { %645 = vmatpush3.msra.mxu0 %v192_v8  ;;  %v197_v17 = vld [vmem:[%s989_s1 + $0x20] sm:$0xff]  ;;  %v198_v35 = vld [vmem:[%s989_s1 + $0x28] sm:$0xff]  ;;  %v199_v36 = vld [vmem:[%s989_s1 + $0x30] sm:$0xff]  ;;  %p752_p1 = pneg %p751_p0  ;;  %p757_p3 = scmp.lt.s32.totalorder %s755_s3, %s749_s29 }
  0x25   : > { %646 = vmatprep.subr.mxu0 %v191_v9  ;;  %666 = vmatprep.mubr.msk.f32.mxu1 %vm226_vm0, %v197_v17  ;;  %v200_v37 = vld [vmem:[%s989_s1 + $0x38] sm:$0xff]  ;;  %v201_v55 = vld [vmem:[%s989_s1 + $0x40] sm:$0xff] }
  0x26   : > { %208 = vperm.xlu1 %728, %v905_v10   ;;  %647 = vmatpush3.msra.mxu0 %v191_v9  ;;  %p758_p4 = por %p757_p3, %p756_p2 }
  0x27   : > { %218 = vperm.xlu0 %727, %v204_v11   ;;  %648 = vmatprep.subr.mxu0 %v190_v12 }
  0x28   : > { %649 = vmatpush3.msra.mxu0 %v190_v12  ;;  %p759_p5 = pnand %p758_p4, %p752_p1 }
  0x29   : > { %650 = vmatprep.subr.mxu0 %v189_v13 }
  0x2a   : > { %651 = vmatpush3.msra.mxu0 %v189_v13  ;;  %730 = vset.pattern.permute.xlu1 %v812_v18 }
  0x2b   : > { %653 = vmatmul.mubr.msk.f32.vlgmr.msra.gmra.mxu0 %vm226_vm0, %v194_v14  ;;  %729 = vset.pattern.permute.xlu0 %v812_v18 }
  0x2c   : > { %655 = vmatprep.mubr.msk.f32.mxu0 %vm226_vm0, %v195_v15  ;;  %337 = vperm.xlu1 %730, %v204_v11  }
  0x2d   : > { %341 = vperm.xlu0 %729, %v205_v6   ;;  %672 = vmatprep.subr.mxu0 %v813_v38 }
  0x2f   : > { %656 = vmatmul.mubr.msk.f32.gmra.mxu0 %vm226_vm0, %v196_v16 }
  0x30   : > { %333 = vperm.xlu1 %730, %v203_v7   ;;  %680 = vmatprep.mubr.msk.f32.mxu0 %vm814_vm1, %v813_v38 }
  0x31   : > { %329 = vperm.xlu0 %729, %v905_v10  }
  0x34   : > { %731 = vset.pattern.permute.xlu1 %v815_v39 }
  0x35   : > { %732 = vset.pattern.permute.xlu0 %v815_v39  ;;  %446 = vperm.xlu1 %731, %v905_v10  }
  0x9d   : > { %v214_v19 = vpop.permute.xlu1 %213 }
  0x9e   : > { %v224_v20 = vpop.permute.xlu0 %223 }
  0xa1   : > { %v209_v24 = vpop.permute.xlu1 %208 }
  0xa2   : > { %v219_v26 = vpop.permute.xlu0 %218 }
  0xa7   : > { %v338_v40 = vpop.permute.xlu1 %337 }
  0xa8   : > { %v342_v41 = vpop.permute.xlu0 %341 }
  0xab   : > { %v334_v44 = vpop.permute.xlu1 %333 }
  0xac   : > { %v330_v47 = vpop.permute.xlu0 %329 }
  0xb0   : > { %v447_v57 = vpop.permute.xlu1 %446 }
  0xeb   : > { %v654_v21 = vpop.f32.mrf.mxu0 }
  0xec   : > { %v311_v28 = vadd.f32 %v654_v21, %v214_v19 }
  0xed   : > { %v305_v22 = vpop.f32.mrf.mxu0 }
  0xee   : > { %v306_v30 = vadd.f32 %v305_v22, %v209_v24 }
  0xef   : > { %v657_v23 = vpop.f32.mrf.mxu0 }
  0xf0   : > { %v321_v25 = vadd.f32 %v657_v23, %v224_v20 }
  0xf1   : > { %v315_v27 = vpop.f32.mrf.mxu0 }
  0xf2   : > { %733 = vtanh.f32 %v321_v25  ;;  %v316_v29 = vadd.f32 %v315_v27, %v219_v26 }
  0xf4   : > { %735 = vtanh.f32 %v316_v29 }
  0xf5   : > { %737 = vtanh.f32 %v311_v28 }
  0xf6   : > { %739 = vtanh.f32 %v306_v30 }
  0xff   : > { %v734_v31 = vpop.eup %733 }
 0x100   : > { %658 = vmatprep.subr.mxu1 %v734_v31 }
 0x101   : > { %v736_v32 = vpop.eup %735  ;;  %659 = vmatpush3.msra.mxu1 %v734_v31 }
 0x102   : > { %660 = vmatprep.subr.mxu1 %v736_v32  ;;  %v738_v33 = vpop.eup %737 }
 0x103   : > { %661 = vmatpush3.msra.mxu1 %v736_v32  ;;  %v740_v34 = vpop.eup %739 }
 0x104   : > { %662 = vmatprep.subr.mxu1 %v738_v33 }
 0x105   : > { %663 = vmatpush3.msra.mxu1 %v738_v33 }
 0x106   : > { %664 = vmatprep.subr.mxu1 %v740_v34 }
 0x107   : > { %665 = vmatpush3.msra.mxu1 %v740_v34 }
 0x108   : > { %667 = vmatmul.mubr.msk.f32.vlgmr.msra.gmra.mxu1 %vm226_vm0, %v198_v35 }
 0x109   : > { %669 = vmatprep.mubr.msk.f32.mxu1 %vm226_vm0, %v199_v36 }
 0x10c   : > { %670 = vmatmul.mubr.msk.f32.gmra.mxu1 %vm226_vm0, %v200_v37 }
 0x1c8   : > { %v668_v42 = vpop.f32.mrf.mxu1 }
 0x1c9   : > { %v428_v49 = vadd.f32 %v668_v42, %v334_v44 }
 0x1ca   : > { %v422_v43 = vpop.f32.mrf.mxu1 }
 0x1cb   : > { %v423_v51 = vadd.f32 %v422_v43, %v330_v47 }
 0x1cc   : > { %v671_v45 = vpop.f32.mrf.mxu1 }
 0x1cd   : > { %v438_v46 = vadd.f32 %v671_v45, %v342_v41 }
 0x1ce   : > { %v432_v48 = vpop.f32.mrf.mxu1 }
 0x1cf   : > { %741 = vtanh.f32 %v438_v46  ;;  %v433_v50 = vadd.f32 %v432_v48, %v338_v40 }
 0x1d1   : > { %743 = vtanh.f32 %v433_v50 }
 0x1d2   : > { %745 = vtanh.f32 %v428_v49 }
 0x1d3   : > { %747 = vtanh.f32 %v423_v51 }
 0x1dc   : > { %v742_v52 = vpop.eup %741 }
 0x1dd   : > { %673 = vmatpush3.msra.mxu0 %v742_v52 }
 0x1de   : > { %v744_v53 = vpop.eup %743  ;;  %674 = vmatprep.subr.mxu0 %v813_v38 }
 0x1df   : > { %675 = vmatpush3.msra.mxu0 %v744_v53  ;;  %v746_v54 = vpop.eup %745 }
 0x1e0   : > { %676 = vmatprep.subr.mxu0 %v813_v38  ;;  %v748_v56 = vpop.eup %747 }
 0x1e1   : > { %677 = vmatpush3.msra.mxu0 %v746_v54 }
 0x1e2   : > { %678 = vmatprep.subr.mxu0 %v813_v38 }
 0x1e3   : > { %679 = vmatpush3.msra.mxu0 %v748_v56 }
 0x1e4   : > { %681 = vmatmul.mubr.msk.f32.vlgmr.msra.gmra.mxu0 %vm226_vm0, %v201_v55 }
 0x2a4   : > { %v518_v58 = vpop.f32.mrf.mxu0 }
 0x2a5   : > { %v519_v59 = vadd.f32 %v518_v58, %v447_v57 }
 0x2a6   : > { %v682_v60 = vpop.f32.mrf.mxu0 }
 0x2a7   : > { %522 = vst [vmem:[%s188_s22] sm:$0x3f] %v519_v59 }
 0x2a8   : > { %762 = shalt.err (!%p759_p5)
}
 0x2a9   : > { %s763_s4 = scalar_lea.hbm %s951_s26, 128  ;;  %s767_s6 = scalar_lea.hbm %s990_s2, 256 }
 0x2aa   : > { %p764_p7 = scmp.ne.s32.totalorder %s951_s26, %s763_s4  ;;  %p768_p12 = scmp.lt.s32.totalorder %s951_s26, %s990_s2 }
 0x2ab   : > { %p769_p13 = scmp.lt.s32.totalorder %s767_s6, %s763_s4 }
 0x2ac   : > { %p765_p10 = pnand %p764_p7, %p870_p6 }
 0x2ad   : > { %p770_p0 = por %p769_p13, %p768_p12 }
 0x2ae   : > { %p766_p11 = pneg %p765_p10 }
 0x2b0   : > { %p771_p1 = pnand %p770_p0, %p766_p11 }
 0x2b2   : > { %774 = shalt.err (!%p771_p1)
}
 0x2b3   : > { %683 = dma.vmem_to_hbm [thread:$0]  (%p870_p6), %s538_s23, 128, %s951_s26, %s524_s27  }
 0x2b4 PF: > { %s549_s14 = sand.u32 1, %s797_s9   ;;  %p686_p2 = pnand %p604_p9, %p874_p8 }
 0x2b5   : > { %s550_s16 = scalar_lea.sflag [#allocation4], %s549_s14 }
 0x2b6   : > { %p687_p3 = pneg %p686_p2 }
 0x2b8   : > { %792 = dma.done.wait (%p687_p3), %s550_s16, 128  }
 0x2b9   : > { %794 = vsyncadd (%p687_p3), %s550_s16, 4294967168  ;;  %p12_p4 = scmp.ge.s32.totalorder %s855_s15, 4   ;;  %s993_s9 = smov %s801_s10 }
 0x2ba   : > { %s994_s10 = smov %s805_s11  ;;  %s995_s11 = smov %s868_s18 }
 0x2bb   : > { %s996_s12 = smov %s855_s15  ;;  %14 = sbr.rel (!%p12_p4) target bundleno = 3 (0x3), region = 106 }
 0x2c0   :  { %555 = vsyncpa [#allocation4], 1 }
 0x2c1   :  { %557 = vsyncpa [#allocation4 + $0x1], 1 }

</bundles_post_ra>
